<compile_context>
chip_gen: v6e
topology: v6e:2x2x1
jax: 0.10.0
libtpu: 0.0.40
codegen_flags: <defaults>
</compile_context>

<pallas_src>
import functools

import jax
import jax.numpy as jnp
from jax.experimental import pallas as pl
from jax.experimental.pallas import tpu as pltpu


def _round_up(v, m):
    return (v + m - 1) // m * m


def _num_tensorcores_per_device():
    """2 on chips where a 'parallel' grid axis can shard across TensorCores."""
    try:
        kind = jax.devices()[0].device_kind.lower()
    except Exception:
        return 1
    if any(tag in kind for tag in ("v4", "v5p", "v7", "7x")):
        return 2
    return 1


def _vmem_limit_bytes():
    """Conservative, generation-aware scoped-VMEM request."""
    cap = 64 * 1024 * 1024
    try:
        info = pltpu.get_tpu_info()
        cap = int(getattr(info, "vmem_capacity_bytes", cap))
    except Exception:
        pass
    # Leave headroom below physical capacity; never ask for less than 32 MiB.
    return int(min(max(cap - 16 * 1024 * 1024, 32 * 1024 * 1024),
                   96 * 1024 * 1024))


def _dice_partial_sums_kernel(x_ref, t_ref,
                              inter_ref, psq_ref, tsq_ref,
                              inter_acc, psq_acc, tsq_acc,
                              *, normalization, s_valid, tile_s, n_s_blocks,
                              need_mask):
    """Grid = (NSPLIT, NB, n_s_blocks).

    Axis 0 ("parallel") splits the spatial blocks between TensorCores (each
    split writes its own partial-sum output block); axes 1 and 2
    ("arbitrary") are the reduction over the leading dim and the spatial
    tiles.  Per-row partial sums are accumulated in VMEM scratch and flushed
    on the last reduction step.
    """
    n = pl.program_id(1)
    j = pl.program_id(2)

    @pl.when((n == 0) & (j == 0))
    def _():
        inter_acc[...] = jnp.zeros_like(inter_acc)
        psq_acc[...] = jnp.zeros_like(psq_acc)
        tsq_acc[...] = jnp.zeros_like(tsq_acc)

    x = x_ref[...].astype(jnp.float32)
    t = t_ref[...].astype(jnp.float32)     # target.float() in the reference

    # self.normalization(input).  For 'softmax' the block's axis 0 holds the
    # C channels of one batch element, so softmax(axis=0) == nn.Softmax(dim=1).
    if normalization == 'sigmoid':
        p = jax.nn.sigmoid(x)
    elif normalization == 'softmax':
        p = jax.nn.softmax(x, axis=0)
    else:  # 'none'
        p = x

    def _accumulate(pv, tv):
        inter_acc[...] += jnp.sum(pv * tv, axis=-1, keepdims=True)
        psq_acc[...] += jnp.sum(pv * pv, axis=-1, keepdims=True)
        tsq_acc[...] += jnp.sum(tv * tv, axis=-1, keepdims=True)

    if need_mask:
        # No wrapper-side padding: the last block is partial and its tail
        # lanes hold undefined data for BOTH inputs, so mask p AND t there.
        # Clean (fully in-bounds) tiles skip the mask entirely via pl.when.
        c = pl.program_id(0)
        start = (c * n_s_blocks + j) * tile_s
        is_full = (start + tile_s) <= s_valid

        @pl.when(is_full)
        def _():
            _accumulate(p, t)

        @pl.when(jnp.logical_not(is_full))
        def _():
            lane = jax.lax.broadcasted_iota(jnp.int32, p.shape, 1) + start
            valid = lane < s_valid
            _accumulate(jnp.where(valid, p, 0.0), jnp.where(valid, t, 0.0))
    else:
        _accumulate(p, t)

    @pl.when((n == pl.num_programs(1) - 1) & (j == pl.num_programs(2) - 1))
    def _():
        inter_ref[...] = inter_acc[...]
        psq_ref[...] = psq_acc[...]
        tsq_ref[...] = tsq_acc[...]


def dice_loss(x, target, weight=None, normalization='sigmoid', epsilon=1e-6):
    """Forward pass of _AbstractDiceLoss with the canonical per-channel dice."""
    assert x.shape == target.shape
    assert normalization in ('sigmoid', 'softmax', 'none')
    N, C = x.shape[0], x.shape[1]
    S = 1
    for d in x.shape[2:]:
        S *= d

    # Layout selection (free reshapes, no transpose / extra HBM pass):
    #  * 'softmax' needs all C channels of one batch element in the block ->
    #    (N, C, S) with (C, TS) blocks, grid over the batch.
    #  * 'sigmoid'/'none' are elementwise -> (1, N*C, S) with (N*C, TS) blocks
    #    so batch+channel rows fill the sublane axis (fixes C<8 vreg waste).
    if normalization == 'softmax':
        R, NB = C, N
    else:
        R, NB = N * C, 1
    xr = x.reshape(NB, R, S)
    tr = target.reshape(NB, R, S)

    NSPLIT = _num_tensorcores_per_device()

    # ---- tile sizing: big tiles, sublane/dtype-aware VMEM budget -----------
    vmem_limit = _vmem_limit_bytes()

    def _padded_row_bytes(dt):
        dt = jnp.dtype(dt)
        sublane = max(1, 32 // dt.itemsize)      # 8 f32 / 16 bf16 / 32 int8
        return _round_up(R, sublane) * dt.itemsize

    # Pipeline footprint per spatial lane: 2 inputs x 2 buffers; keep the
    # double-buffered inputs to ~1/4 of the limit (rest: f32 temporaries).
    bytes_per_lane = _padded_row_bytes(xr.dtype) + _padded_row_bytes(tr.dtype)
    input_budget = vmem_limit // 4
    ts_budget = max(128, (input_budget // (2 * bytes_per_lane)) // 128 * 128)
    TS_MAX = 64 * 1024                            # bounds in-kernel f32 temps
    TS = max(128, min(TS_MAX, ts_budget, _round_up(pl.cdiv(S, NSPLIT), 128)))

    total_blocks = pl.cdiv(S, TS)
    if NSPLIT > 1 and total_blocks % NSPLIT != 0:
        NSPLIT = 1          # keep every grid step mapped to a real block
    n_s_blocks = total_blocks // NSPLIT
    need_mask = (S % TS) != 0                     # only the global last block

    kernel = functools.partial(
        _dice_partial_sums_kernel,
        normalization=normalization,
        s_valid=S, tile_s=TS, n_s_blocks=n_s_blocks, need_mask=need_mask)

    in_spec = pl.BlockSpec((None, R, TS),
                           lambda c, n, j: (n, 0, c * n_s_blocks + j))
    out_spec = pl.BlockSpec((None, R, 1), lambda c, n, j: (c, 0, 0))
    out_shape = tuple(jax.ShapeDtypeStruct((NSPLIT, R, 1), jnp.float32)
                      for _ in range(3))

    inter, psq, tsq = pl.pallas_call(
        kernel,
        out_shape=out_shape,
        grid_spec=pltpu.PrefetchScalarGridSpec(
            num_scalar_prefetch=0,
            grid=(NSPLIT, NB, n_s_blocks),
            in_specs=[in_spec, in_spec],
            out_specs=[out_spec, out_spec, out_spec],
            scratch_shapes=[
                pltpu.VMEM((R, 1), jnp.float32),   # sum(p * t)
                pltpu.VMEM((R, 1), jnp.float32),   # sum(p * p)
                pltpu.VMEM((R, 1), jnp.float32),   # sum(t * t)
            ],
        ),
        compiler_params=pltpu.CompilerParams(
            dimension_semantics=("parallel", "arbitrary", "arbitrary"),
            vmem_limit_bytes=vmem_limit),
    )(xr, tr)

    # Tiny epilogue on (NSPLIT, R, 1) partials: combine cores, reduce batch
    # rows (flat layout), apply weight, clamp, dice, mean.
    inter = jnp.sum(inter, axis=0)[:, 0]
    psq = jnp.sum(psq, axis=0)[:, 0]
    tsq = jnp.sum(tsq, axis=0)[:, 0]
    if normalization != 'softmax':
        inter = inter.reshape(N, C).sum(axis=0)
        psq = psq.reshape(N, C).sum(axis=0)
        tsq = tsq.reshape(N, C).sum(axis=0)
    denominator = psq + tsq
    if weight is not None:
        inter = jnp.asarray(weight, jnp.float32).reshape(-1) * inter
    per_channel_dice = 2.0 * inter / jnp.maximum(denominator, float(epsilon))
    return 1.0 - jnp.mean(per_channel_dice)


def _reference_dice_loss(x, target, weight=None, normalization='sigmoid',
                         epsilon=1e-6):
    """Pure-JAX reference mirroring the PyTorch code."""
    if normalization == 'sigmoid':
        p = jax.nn.sigmoid(x)
    elif normalization == 'softmax':
        p = jax.nn.softmax(x, axis=1)
    else:
        p = x
    C = x.shape[1]
    perm = (1, 0) + tuple(range(2, x.ndim))
    pf = jnp.transpose(p, perm).reshape(C, -1)
    tf = jnp.transpose(target, perm).reshape(C, -1).astype(jnp.float32)
    intersect = jnp.sum(pf * tf, axis=-1)
    if weight is not None:
        intersect = weight * intersect
    denom = jnp.sum(pf * pf, axis=-1) + jnp.sum(tf * tf, axis=-1)
    dice = 2.0 * intersect / jnp.maximum(denom, epsilon)
    return 1.0 - jnp.mean(dice)


if __name__ == "__main__":
    key = jax.random.PRNGKey(0)
    k = jax.random.split(key, 6)

    # Case 1: module defaults (weight=None, sigmoid), NCHW, 128-aligned S
    # (flat (N*C, S) layout, no masking).
    N, C, H, W = 2, 4, 16, 16
    x = jax.random.normal(k[0], (N, C, H, W), jnp.float32)
    t = (jax.random.uniform(k[1], (N, C, H, W)) > 0.5).astype(jnp.float32)
    loss = jax.jit(lambda a, b: dice_loss(a, b))(x, t)
    jax.block_until_ready(loss)
    ref = _reference_dice_loss(x, t)
    assert jnp.allclose(loss, ref, atol=1e-5, rtol=1e-5), (loss, ref)

    # Case 2: softmax + per-channel weight, 5-D NCDHW, S not 128-aligned
    # (channel-block layout + partial-last-block mask, no padding).
    N2, C2, D2, H2, W2 = 2, 3, 3, 5, 9
    x2 = jax.random.normal(k[2], (N2, C2, D2, H2, W2), jnp.float32)
    t2 = (jax.random.uniform(k[3], (N2, C2, D2, H2, W2)) > 0.5).astype(jnp.float32)
    w2 = jnp.array([0.2, 0.5, 0.3], jnp.float32)
    loss2 = jax.jit(
        lambda a, b, w: dice_loss(a, b, weight=w, normalization='softmax')
    )(x2, t2, w2)
    jax.block_until_ready(loss2)
    ref2 = _reference_dice_loss(x2, t2, weight=w2, normalization='softmax')
    assert jnp.allclose(loss2, ref2, atol=1e-5, rtol=1e-5), (loss2, ref2)

    # Case 3: sigmoid with a non-128-aligned spatial size
    # (flat layout + partial-last-block mask, no padding).
    N3, C3, H3, W3 = 2, 4, 7, 9
    x3 = jax.random.normal(k[4], (N3, C3, H3, W3), jnp.float32)
    t3 = (jax.random.uniform(k[5], (N3, C3, H3, W3)) > 0.5).astype(jnp.float32)
    loss3 = jax.jit(lambda a, b: dice_loss(a, b))(x3, t3)
    jax.block_until_ready(loss3)
    ref3 = _reference_dice_loss(x3, t3)
    assert jnp.allclose(loss3, ref3, atol=1e-5, rtol=1e-5), (loss3, ref3)

    print("KERNEL_OK")
</pallas_src>

<mosaic_0001>
module attributes {stable_mosaic.version = 11 : i64} {
  func.func @_dice_partial_sums_kernel(%arg0: i32, %arg1: i32, %arg2: i32, %arg3: memref<1x8x256xf32, #tpu.memory_space<vmem>>, %arg4: memref<1x8x256xf32, #tpu.memory_space<vmem>>, %arg5: memref<1x8x1xf32, #tpu.memory_space<vmem>>, %arg6: memref<1x8x1xf32, #tpu.memory_space<vmem>>, %arg7: memref<1x8x1xf32, #tpu.memory_space<vmem>>, %arg8: memref<8x1xf32, #tpu.memory_space<vmem>>, %arg9: memref<8x1xf32, #tpu.memory_space<vmem>>, %arg10: memref<8x1xf32, #tpu.memory_space<vmem>>) attributes {dimension_semantics = [#tpu.dimension_semantics<parallel>, #tpu.dimension_semantics<arbitrary>, #tpu.dimension_semantics<arbitrary>], iteration_bounds = array<i64: 1, 1, 1>, scalar_prefetch = 0 : i64, scratch_operands = 3 : i64, tpu.core_type = #tpu.core_type<tc>, window_params = [{transform_indices = @transform_0, window_bounds = array<i64: 1, 8, 256>}, {transform_indices = @transform_1, window_bounds = array<i64: 1, 8, 256>}, {transform_indices = @transform_2, window_bounds = array<i64: 1, 8, 1>}, {transform_indices = @transform_3, window_bounds = array<i64: 1, 8, 1>}, {transform_indices = @transform_4, window_bounds = array<i64: 1, 8, 1>}]} {
    %c0_i32 = arith.constant 0 : i32
    %0 = arith.cmpi eq, %arg1, %c0_i32 : i32
    %c0_i32_0 = arith.constant 0 : i32
    %1 = arith.cmpi eq, %arg2, %c0_i32_0 : i32
    %2 = arith.andi %0, %1 : i1
    %3 = arith.extui %2 : i1 to i32
    %c0_i32_1 = arith.constant 0 : i32
    %4 = arith.cmpi ne, %3, %c0_i32_1 : i32
    scf.if %4 {
      %cst_25 = arith.constant 0.000000e+00 : f32
      %37 = vector.broadcast %cst_25 : f32 to vector<8x1xf32>
      %c0_26 = arith.constant 0 : index
      %c0_27 = arith.constant 0 : index
      %38 = vector.load %arg8[%c0_26, %c0_27] : memref<8x1xf32, #tpu.memory_space<vmem>>, vector<8x1xf32>
      tpu.vector_store %arg8[%c0_26, %c0_27], %37 {strides = array<i32>} : memref<8x1xf32, #tpu.memory_space<vmem>>, vector<8x1xf32>,
      %cst_28 = arith.constant 0.000000e+00 : f32
      %39 = vector.broadcast %cst_28 : f32 to vector<8x1xf32>
      %c0_29 = arith.constant 0 : index
      %c0_30 = arith.constant 0 : index
      %40 = vector.load %arg9[%c0_29, %c0_30] : memref<8x1xf32, #tpu.memory_space<vmem>>, vector<8x1xf32>
      tpu.vector_store %arg9[%c0_29, %c0_30], %39 {strides = array<i32>} : memref<8x1xf32, #tpu.memory_space<vmem>>, vector<8x1xf32>,
      %cst_31 = arith.constant 0.000000e+00 : f32
      %41 = vector.broadcast %cst_31 : f32 to vector<8x1xf32>
      %c0_32 = arith.constant 0 : index
      %c0_33 = arith.constant 0 : index
      %42 = vector.load %arg10[%c0_32, %c0_33] : memref<8x1xf32, #tpu.memory_space<vmem>>, vector<8x1xf32>
      tpu.vector_store %arg10[%c0_32, %c0_33], %41 {strides = array<i32>} : memref<8x1xf32, #tpu.memory_space<vmem>>, vector<8x1xf32>,
    } else {
    }
    %c0 = arith.constant 0 : index
    %c0_2 = arith.constant 0 : index
    %c0_3 = arith.constant 0 : index
    %5 = vector.load %arg3[%c0, %c0_2, %c0_3] : memref<1x8x256xf32, #tpu.memory_space<vmem>>, vector<1x8x256xf32>
    %6 = vector.shape_cast %5 : vector<1x8x256xf32> to vector<8x256xf32>
    %c0_4 = arith.constant 0 : index
    %c0_5 = arith.constant 0 : index
    %c0_6 = arith.constant 0 : index
    %7 = vector.load %arg4[%c0_4, %c0_5, %c0_6] : memref<1x8x256xf32, #tpu.memory_space<vmem>>, vector<1x8x256xf32>
    %8 = vector.shape_cast %7 : vector<1x8x256xf32> to vector<8x256xf32>
    %9 = arith.negf %6 : vector<8x256xf32>
    %10 = math.exp %9 : vector<8x256xf32>
    %cst = arith.constant 1.000000e+00 : f32
    %11 = vector.broadcast %cst : f32 to vector<8x256xf32>
    %12 = arith.addf %11, %10 : vector<8x256xf32>
    %13 = arith.divf %11, %12 : vector<8x256xf32>
    %c0_7 = arith.constant 0 : index
    %c0_8 = arith.constant 0 : index
    %14 = vector.load %arg8[%c0_7, %c0_8] : memref<8x1xf32, #tpu.memory_space<vmem>>, vector<8x1xf32>
    %15 = arith.mulf %13, %8 : vector<8x256xf32>
    %cst_9 = arith.constant dense<0.000000e+00> : vector<8xf32>
    %16 = vector.multi_reduction <add>, %15, %cst_9 [1] : vector<8x256xf32> to vector<8xf32>
    %17 = vector.shape_cast %16 : vector<8xf32> to vector<8x1xf32>
    %18 = arith.addf %14, %17 : vector<8x1xf32>
    %c0_10 = arith.constant 0 : index
    %c0_11 = arith.constant 0 : index
    %19 = vector.load %arg8[%c0_10, %c0_11] : memref<8x1xf32, #tpu.memory_space<vmem>>, vector<8x1xf32>
    tpu.vector_store %arg8[%c0_10, %c0_11], %18 {strides = array<i32>} : memref<8x1xf32, #tpu.memory_space<vmem>>, vector<8x1xf32>,
    %c0_12 = arith.constant 0 : index
    %c0_13 = arith.constant 0 : index
    %20 = vector.load %arg9[%c0_12, %c0_13] : memref<8x1xf32, #tpu.memory_space<vmem>>, vector<8x1xf32>
    %21 = arith.mulf %13, %13 : vector<8x256xf32>
    %cst_14 = arith.constant dense<0.000000e+00> : vector<8xf32>
    %22 = vector.multi_reduction <add>, %21, %cst_14 [1] : vector<8x256xf32> to vector<8xf32>
    %23 = vector.shape_cast %22 : vector<8xf32> to vector<8x1xf32>
    %24 = arith.addf %20, %23 : vector<8x1xf32>
    %c0_15 = arith.constant 0 : index
    %c0_16 = arith.constant 0 : index
    %25 = vector.load %arg9[%c0_15, %c0_16] : memref<8x1xf32, #tpu.memory_space<vmem>>, vector<8x1xf32>
    tpu.vector_store %arg9[%c0_15, %c0_16], %24 {strides = array<i32>} : memref<8x1xf32, #tpu.memory_space<vmem>>, vector<8x1xf32>,
    %c0_17 = arith.constant 0 : index
    %c0_18 = arith.constant 0 : index
    %26 = vector.load %arg10[%c0_17, %c0_18] : memref<8x1xf32, #tpu.memory_space<vmem>>, vector<8x1xf32>
    %27 = arith.mulf %8, %8 : vector<8x256xf32>
    %cst_19 = arith.constant dense<0.000000e+00> : vector<8xf32>
    %28 = vector.multi_reduction <add>, %27, %cst_19 [1] : vector<8x256xf32> to vector<8xf32>
    %29 = vector.shape_cast %28 : vector<8xf32> to vector<8x1xf32>
    %30 = arith.addf %26, %29 : vector<8x1xf32>
    %c0_20 = arith.constant 0 : index
    %c0_21 = arith.constant 0 : index
    %31 = vector.load %arg10[%c0_20, %c0_21] : memref<8x1xf32, #tpu.memory_space<vmem>>, vector<8x1xf32>
    tpu.vector_store %arg10[%c0_20, %c0_21], %30 {strides = array<i32>} : memref<8x1xf32, #tpu.memory_space<vmem>>, vector<8x1xf32>,
    %c0_i32_22 = arith.constant 0 : i32
    %32 = arith.cmpi eq, %arg1, %c0_i32_22 : i32
    %c0_i32_23 = arith.constant 0 : i32
    %33 = arith.cmpi eq, %arg2, %c0_i32_23 : i32
    %34 = arith.andi %32, %33 : i1
    %35 = arith.extui %34 : i1 to i32
    %c0_i32_24 = arith.constant 0 : i32
    %36 = arith.cmpi ne, %35, %c0_i32_24 : i32
    scf.if %36 {
      %c0_25 = arith.constant 0 : index
      %c0_26 = arith.constant 0 : index
      %37 = vector.load %arg8[%c0_25, %c0_26] : memref<8x1xf32, #tpu.memory_space<vmem>>, vector<8x1xf32>
      %c0_27 = arith.constant 0 : index
      %c0_28 = arith.constant 0 : index
      %c0_29 = arith.constant 0 : index
      %38 = vector.load %arg5[%c0_27, %c0_28, %c0_29] : memref<1x8x1xf32, #tpu.memory_space<vmem>>, vector<1x8x1xf32>
      %39 = vector.shape_cast %38 : vector<1x8x1xf32> to vector<8x1xf32>
      %40 = vector.shape_cast %37 : vector<8x1xf32> to vector<1x8x1xf32>
      tpu.vector_store %arg5[%c0_27, %c0_28, %c0_29], %40 {strides = array<i32>} : memref<1x8x1xf32, #tpu.memory_space<vmem>>, vector<1x8x1xf32>,
      %c0_30 = arith.constant 0 : index
      %c0_31 = arith.constant 0 : index
      %41 = vector.load %arg9[%c0_30, %c0_31] : memref<8x1xf32, #tpu.memory_space<vmem>>, vector<8x1xf32>
      %c0_32 = arith.constant 0 : index
      %c0_33 = arith.constant 0 : index
      %c0_34 = arith.constant 0 : index
      %42 = vector.load %arg6[%c0_32, %c0_33, %c0_34] : memref<1x8x1xf32, #tpu.memory_space<vmem>>, vector<1x8x1xf32>
      %43 = vector.shape_cast %42 : vector<1x8x1xf32> to vector<8x1xf32>
      %44 = vector.shape_cast %41 : vector<8x1xf32> to vector<1x8x1xf32>
      tpu.vector_store %arg6[%c0_32, %c0_33, %c0_34], %44 {strides = array<i32>} : memref<1x8x1xf32, #tpu.memory_space<vmem>>, vector<1x8x1xf32>,
      %c0_35 = arith.constant 0 : index
      %c0_36 = arith.constant 0 : index
      %45 = vector.load %arg10[%c0_35, %c0_36] : memref<8x1xf32, #tpu.memory_space<vmem>>, vector<8x1xf32>
      %c0_37 = arith.constant 0 : index
      %c0_38 = arith.constant 0 : index
      %c0_39 = arith.constant 0 : index
      %46 = vector.load %arg7[%c0_37, %c0_38, %c0_39] : memref<1x8x1xf32, #tpu.memory_space<vmem>>, vector<1x8x1xf32>
      %47 = vector.shape_cast %46 : vector<1x8x1xf32> to vector<8x1xf32>
      %48 = vector.shape_cast %45 : vector<8x1xf32> to vector<1x8x1xf32>
      tpu.vector_store %arg7[%c0_37, %c0_38, %c0_39], %48 {strides = array<i32>} : memref<1x8x1xf32, #tpu.memory_space<vmem>>, vector<1x8x1xf32>,
    } else {
    }
    return
  }
  func.func @transform_0(%arg0: i32, %arg1: i32, %arg2: i32) -> (i32, i32, i32) {
    %c1_i32 = arith.constant 1 : i32
    %0 = arith.muli %arg0, %c1_i32 : i32
    %1 = arith.addi %0, %arg2 : i32
    %c0_i32 = arith.constant 0 : i32
    %c0_i32_0 = arith.constant 0 : i32
    return %arg1, %c0_i32, %1 : i32, i32, i32
  }
  func.func @transform_1(%arg0: i32, %arg1: i32, %arg2: i32) -> (i32, i32, i32) {
    %c1_i32 = arith.constant 1 : i32
    %0 = arith.muli %arg0, %c1_i32 : i32
    %1 = arith.addi %0, %arg2 : i32
    %c0_i32 = arith.constant 0 : i32
    %c0_i32_0 = arith.constant 0 : i32
    return %arg1, %c0_i32, %1 : i32, i32, i32
  }
  func.func @transform_2(%arg0: i32, %arg1: i32, %arg2: i32) -> (i32, i32, i32) {
    %c0_i32 = arith.constant 0 : i32
    %c0_i32_0 = arith.constant 0 : i32
    %c0_i32_1 = arith.constant 0 : i32
    return %arg0, %c0_i32, %c0_i32_0 : i32, i32, i32
  }
  func.func @transform_3(%arg0: i32, %arg1: i32, %arg2: i32) -> (i32, i32, i32) {
    %c0_i32 = arith.constant 0 : i32
    %c0_i32_0 = arith.constant 0 : i32
    %c0_i32_1 = arith.constant 0 : i32
    return %arg0, %c0_i32, %c0_i32_0 : i32, i32, i32
  }
  func.func @transform_4(%arg0: i32, %arg1: i32, %arg2: i32) -> (i32, i32, i32) {
    %c0_i32 = arith.constant 0 : i32
    %c0_i32_0 = arith.constant 0 : i32
    %c0_i32_1 = arith.constant 0 : i32
    return %arg0, %c0_i32, %c0_i32_0 : i32, i32, i32
  }
}

</mosaic_0001>

<bundles_post_ra>
// kernel: squeeze.3
= control target key start
LH: loop header
LB: loop body
LE: loop exit
PB: predicated region body
PF: predicated region fallthrough
CT: control target
= control target key end

     0   :  { %vm8_vm0 = vcmask 31744   ;;  %s42_s0 = inlined_call_operand.vmem [shape: f32[8], index: 0, kind: input, shape index: {}]   ;;  %s43_s1 = inlined_call_operand.vmem [shape: f32[2,4], index: 1, kind: output, shape index: {}]  }
   0x1   :  { %v5_v0 = vld [vmem:[%s42_s0] sm:$0x1]  ;;  %s25_s0 = smov 124  }
   0x2   :  { %6 = vst [vmem:[#allocation1] sm:$0x1] %v5_v0 }
   0x9   :  { %v10_v1 = vld [vmem:[#allocation1] sm:$0x1]  }
   0xa   :  { %v7_v2 = vld [vmem:[#allocation1] sm:$0x1]   ;;  %11 = vrot.lane.b32.xlu0 %v10_v1, %s25_s0 }
   0xb   :  { %9 = vst.msk [vmem:[#allocation0] sm:$0x1] %vm8_vm0, %v7_v2  }
  0x7c   :  { %v12_v3 = vpop.permute.xlu0 %11  }
  0x7d   :  { %15 = vst.msk [vmem:[#allocation0 + $0x1] sm:$0x1] %vm8_vm0, %v12_v3  }
  0x84   :  { %v20_v4 = vld [vmem:[#allocation0] sm:$0x3] }
  0x85   :  { %23 = vst [vmem:[%s43_s1] sm:$0x3] %v20_v4 }

// kernel: _lambda_.1
= control target key start
LH: loop header
LB: loop body
LE: loop exit
PB: predicated region body
PF: predicated region fallthrough
CT: control target
= control target key end

     0   :  { %vm64_vm0 = vcmask 7168   ;;  %v152_v3 = vmov 0.0   ;;  %s208_s0 = inlined_call_operand.vmem [shape: f32[1,8,256], index: 0, kind: input, shape index: {}]   ;;  %s209_s1 = inlined_call_operand.vmem [shape: f32[1,8,256], index: 1, kind: input, shape index: {}]   ;;  %s210_s4 = inlined_call_operand.vmem [shape: f32[1,8,1], index: 4, kind: output, shape index: {2}]   ;;  %s211_s2 = inlined_call_operand.vmem [shape: f32[1,8,1], index: 2, kind: output, shape index: {0}]   ;;  %s212_s3 = inlined_call_operand.vmem [shape: f32[1,8,1], index: 3, kind: output, shape index: {1}]  }
   0x1   :  { %v68_v0 = vld [vmem:[%s208_s0] sm:$0xff]  ;;  %v69_v1 = vld [vmem:[%s208_s0 + $0x8] sm:$0xff]  ;;  %65 = vst.msk [vmem:[#allocation2] sm:$0xff] %vm64_vm0, %v152_v3  ;;  %66 = vst.msk [vmem:[#allocation3] sm:$0xff] %vm64_vm0, %v152_v3 }
   0x2   :  { %v70_v2 = vld [vmem:[%s209_s1] sm:$0xff]  ;;  %67 = vst.msk [vmem:[#allocation4] sm:$0xff] %vm64_vm0, %v152_v3  ;;  %v71_v4 = vld [vmem:[%s209_s1 + $0x8] sm:$0xff]  ;;  %v141_v5 = vmul.f32 -1.442695, %v68_v0 }
   0x3   :  { %v142_v6 = vmul.f32 -1.442695, %v69_v1  ;;  %v102_v7 = vmul.f32 %v70_v2, %v70_v2  ;;  %v103_v8 = vmul.f32 %v71_v4, %v71_v4 }
   0x4   :  { %144 = vpow2.f32 %v141_v5 }
   0x5   :  { %146 = vpow2.f32 %v142_v6  ;;  %v104_v9 = vadd.f32 %v103_v8, %v102_v7 }
   0x7   :  { %105 = vadd.xlane.f32.xlu1 %v104_v9 }
   0x8   :  { %v84_v26 = vld [vmem:[#allocation2] sm:$0xff]  ;;  %v93_v29 = vld [vmem:[#allocation3] sm:$0xff] }
   0x9   :  { %v101_v22 = vld [vmem:[#allocation4] sm:$0xff] }
  0x11   :  { %v145_v10 = vpop.eup %144 }
  0x12   :  { %v147_v11 = vpop.eup %146  ;;  %v78_v12 = vadd.f32 1.0, %v145_v10 }
  0x13   :  { %v79_v13 = vadd.f32 1.0, %v147_v11 }
  0x14   :  { %148 = vrcp.f32 %v78_v12 }
  0x15   :  { %150 = vrcp.f32 %v79_v13 }
  0x21   :  { %v149_v14 = vpop.eup %148 }
  0x22   :  { %v151_v15 = vpop.eup %150  ;;  %v85_v16 = vmul.f32 %v149_v14, %v70_v2  ;;  %v94_v18 = vmul.f32 %v149_v14, %v149_v14 }
  0x23   :  { %v86_v17 = vmul.f32 %v151_v15, %v71_v4  ;;  %v95_v19 = vmul.f32 %v151_v15, %v151_v15 }
  0x25   :  { %v87_v20 = vadd.f32 %v86_v17, %v85_v16  ;;  %v96_v21 = vadd.f32 %v95_v19, %v94_v18 }
  0x27   :  { %88 = vadd.xlane.f32.xlu0 %v87_v20 }
  0x2b   :  { %97 = vadd.xlane.f32.xlu0 %v96_v21 }
  0x90   :  { %v106_v23 = vpop.xlane.xlu1 %105 }
  0x91   :  { %v107_v24 = vadd.f32 %v106_v23, %v101_v22 }
  0x93   :  { %108 = vst.msk [vmem:[#allocation4] sm:$0xff] %vm64_vm0, %v107_v24 }
  0x9a   :  { %v115_v25 = vld [vmem:[#allocation4] sm:$0xff] }
  0x9b   :  { %116 = vst.msk [vmem:[%s210_s4] sm:$0xff] %vm64_vm0, %v115_v25 }
  0xb0   :  { %v89_v27 = vpop.xlane.xlu0 %88 }
  0xb1   :  { %v90_v28 = vadd.f32 %v89_v27, %v84_v26 }
  0xb3   :  { %92 = vst.msk [vmem:[#allocation2] sm:$0xff] %vm64_vm0, %v90_v28 }
  0xb4   :  { %v98_v30 = vpop.xlane.xlu0 %97 }
  0xb5   :  { %v99_v31 = vadd.f32 %v98_v30, %v93_v29 }
  0xb7   :  { %100 = vst.msk [vmem:[#allocation3] sm:$0xff] %vm64_vm0, %v99_v31 }
  0xba   :  { %v111_v32 = vld [vmem:[#allocation2] sm:$0xff] }
  0xbb   :  { %112 = vst.msk [vmem:[%s211_s2] sm:$0xff] %vm64_vm0, %v111_v32 }
  0xbe   :  { %v113_v33 = vld [vmem:[#allocation3] sm:$0xff] }
  0xbf   :  { %114 = vst.msk [vmem:[%s212_s3] sm:$0xff] %vm64_vm0, %v113_v33 }

</bundles_post_ra>
